<compile_context>
chip_gen: v5e
topology: v5e:2x2
jax: 0.10.0
libtpu: 0.0.40
codegen_flags: <defaults>
</compile_context>

<pallas_src>
import jax
import jax.numpy as jnp
from jax.experimental import pallas as pl
from jax.experimental.pallas import tpu as pltpu


def _trainable_relu_kernel(coeff_ref, x_ref, o_ref):
    # coeff_ref: (1, 1) f32 scalar in SMEM; x_ref/o_ref: (block_r, lane_w) VMEM tiles.
    coeff = coeff_ref[0, 0]
    # Compute in f32 (matches torch f32-param * tensor promotion), store in x.dtype.
    y = x_ref[...].astype(jnp.float32) * coeff
    o_ref[...] = jnp.maximum(y, 0.0).astype(o_ref.dtype)


def _scoped_vmem_cap_bytes():
    """Physical VMEM minus headroom for compiler-internal scratch/pipelining."""
    try:
        info = pltpu.get_tpu_info()
        cap = int(getattr(info, "vmem_capacity_bytes", 64 * 1024 * 1024))
    except Exception:
        cap = 64 * 1024 * 1024  # conservative: v7x per-TC VMEM
    return max(32 * 1024 * 1024, cap - 16 * 1024 * 1024)


def trainable_relu(x, coeff, *, target_tile_bytes=8 * 1024 * 1024):
    """relu(coeff * x). x: any-shaped float array (NCHW in the module), coeff: scalar."""
    orig_shape = x.shape
    dtype = x.dtype
    itemsize = jnp.dtype(dtype).itemsize
    total = int(x.size)
    coeff_f32 = jnp.asarray(coeff, dtype=jnp.float32)

    if total == 0:
        return x

    # dtype-aware sublane alignment: 8 rows (f32), 16 (bf16/f16), 32 (int8/fp8).
    sub = max(8, 32 // itemsize)

    flat = x.reshape(-1)  # contiguous reshape: free

    def _jnp_relu(v):
        return jnp.maximum(v.astype(jnp.float32) * coeff_f32, 0.0).astype(dtype)

    # Pick a lane width (multiple of 128) so the whole tensor repacks zero-copy
    # into (rows, lane_w) with sub-aligned rows.  Otherwise use the aligned prefix.
    lane_w, main = None, 0
    for cand in (1024, 512, 256, 128):
        if total % (cand * sub) == 0:
            lane_w, main = cand, total
            break
    if lane_w is None:
        lane_w = 128
        main = (total // (lane_w * sub)) * (lane_w * sub)

    if main == 0:
        # Tensor smaller than one aligned (sub, 128) tile: not worth a kernel launch.
        return _jnp_relu(flat).reshape(orig_shape)

    rows = main // lane_w  # multiple of `sub`

    # ---- row tiling: ~target_tile_bytes per tile, sub-aligned, partial last block OK ----
    tile_r = max(sub, (target_tile_bytes // (lane_w * itemsize)) // sub * sub)
    block_r = min(tile_r, rows)
    grid_n = pl.cdiv(rows, block_r)
    # Ensure >= 2 grid steps when possible so the "parallel" axis can shard across
    # both TensorCores on v7x (neutral on single-TC v5e/v6e).
    if grid_n < 2 and rows >= 2 * sub:
        block_r = ((rows + 1) // 2 + sub - 1) // sub * sub
        grid_n = pl.cdiv(rows, block_r)

    x2d = (flat if main == total else flat[:main]).reshape(rows, lane_w)

    tile_bytes = block_r * lane_w * itemsize
    # 2 double-buffered input tiles + 2 output tiles + headroom, capped per-generation.
    vmem_limit = int(min(max(6 * tile_bytes, 32 * 1024 * 1024), _scoped_vmem_cap_bytes()))

    cost = pl.CostEstimate(
        flops=2 * main,                      # mul + max per element
        transcendentals=0,
        bytes_accessed=2 * main * itemsize,  # one read + one write per element
    )

    out2d = pl.pallas_call(
        _trainable_relu_kernel,
        out_shape=jax.ShapeDtypeStruct((rows, lane_w), dtype),
        grid=(grid_n,),
        in_specs=[
            pl.BlockSpec(memory_space=pltpu.SMEM),              # (1, 1) f32 coeff
            pl.BlockSpec((block_r, lane_w), lambda i: (i, 0)),  # row tile
        ],
        out_specs=pl.BlockSpec((block_r, lane_w), lambda i: (i, 0)),
        compiler_params=pltpu.CompilerParams(
            dimension_semantics=("parallel",),
            vmem_limit_bytes=vmem_limit,
        ),
        cost_estimate=cost,
    )(coeff_f32.reshape(1, 1), x2d)

    out_main = out2d.reshape(-1)
    if main == total:
        return out_main.reshape(orig_shape)
    # Unaligned tail (< sub*128 elements): plain jnp, then stitch back together.
    tail_out = _jnp_relu(flat[main:])
    return jnp.concatenate([out_main, tail_out]).reshape(orig_shape)


if __name__ == "__main__":
    key = jax.random.PRNGKey(0)
    init_coeff = 0.5  # deterministic parameter init (module __init__ takes init_coeff)

    # NCHW input, same convention as the PyTorch module (aligned, zero-copy path).
    x = jax.random.normal(key, (2, 4, 16, 16), dtype=jnp.float32)
    out = jax.block_until_ready(trainable_relu(x, init_coeff))
    ref = jnp.maximum(jnp.float32(init_coeff) * x, 0.0)
    assert out.shape == x.shape and out.dtype == x.dtype
    assert jnp.allclose(out, ref, atol=1e-6), "mismatch (aligned shape)"

    k1, k2, k3, k4 = jax.random.split(key, 4)

    # Unaligned element count: kernel on the aligned prefix + jnp tail + concat.
    x2 = jax.random.normal(k1, (3, 5, 9, 11), dtype=jnp.float32)   # 1485 elems
    out2 = jax.block_until_ready(trainable_relu(x2, init_coeff))
    ref2 = jnp.maximum(jnp.float32(init_coeff) * x2, 0.0)
    assert out2.shape == x2.shape
    assert jnp.allclose(out2, ref2, atol=1e-6), "mismatch (prefix+tail shape)"

    # Tiny tensor (< one aligned tile): pure-jnp fallback.
    x3 = jax.random.normal(k2, (2, 3, 7, 7), dtype=jnp.float32)     # 294 elems
    out3 = jax.block_until_ready(trainable_relu(x3, init_coeff))
    assert jnp.allclose(out3, jnp.maximum(jnp.float32(init_coeff) * x3, 0.0), atol=1e-6)

    # Multi-step grid with forced >=2 blocks and a partial trailing block.
    x5 = jax.random.normal(k3, (2, 5, 32, 128), dtype=jnp.float32)  # rows=40 -> grid=2
    out5 = jax.block_until_ready(trainable_relu(x5, init_coeff))
    ref5 = jnp.maximum(jnp.float32(init_coeff) * x5, 0.0)
    assert jnp.allclose(out5, ref5, atol=1e-6), "mismatch (multi-block / partial block)"

    # bf16 path: dtype-aware sublane alignment (16-row tiles), f32 math in-kernel.
    x4 = jax.random.normal(k4, (2, 4, 16, 16), dtype=jnp.float32).astype(jnp.bfloat16)
    out4 = jax.block_until_ready(trainable_relu(x4, init_coeff))
    ref4 = jnp.maximum(jnp.float32(init_coeff) * x4.astype(jnp.float32), 0.0).astype(jnp.bfloat16)
    assert out4.dtype == jnp.bfloat16
    assert jnp.allclose(out4.astype(jnp.float32), ref4.astype(jnp.float32), atol=1e-2)

    print("KERNEL_OK")
</pallas_src>

<mosaic_0001>
module attributes {stable_mosaic.version = 11 : i64} {
  func.func @_trainable_relu_kernel(%arg0: i32, %arg1: memref<1x1xf32, #tpu.memory_space<smem>>, %arg2: memref<8x256xf32, #tpu.memory_space<vmem>>, %arg3: memref<8x256xf32, #tpu.memory_space<vmem>>) attributes {dimension_semantics = [#tpu.dimension_semantics<parallel>], iteration_bounds = array<i64: 1>, scalar_prefetch = 0 : i64, scratch_operands = 0 : i64, tpu.core_type = #tpu.core_type<tc>, window_params = [{transform_indices = @transform_0, window_bounds = array<i64: 1, 1>}, {transform_indices = @transform_1, window_bounds = array<i64: 8, 256>}, {transform_indices = @transform_2, window_bounds = array<i64: 8, 256>}]} {
    %c0 = arith.constant 0 : index
    %c0_0 = arith.constant 0 : index
    %0 = memref.load %arg1[%c0, %c0_0] : memref<1x1xf32, #tpu.memory_space<smem>>
    %c0_1 = arith.constant 0 : index
    %c0_2 = arith.constant 0 : index
    %1 = vector.load %arg2[%c0_1, %c0_2] : memref<8x256xf32, #tpu.memory_space<vmem>>, vector<8x256xf32>
    %2 = vector.broadcast %0 : f32 to vector<8x256xf32>
    %3 = arith.mulf %1, %2 : vector<8x256xf32>
    %cst = arith.constant 0.000000e+00 : f32
    %4 = vector.broadcast %cst : f32 to vector<8x256xf32>
    %5 = arith.maximumf %3, %4 : vector<8x256xf32>
    %c0_3 = arith.constant 0 : index
    %c0_4 = arith.constant 0 : index
    %6 = vector.load %arg3[%c0_3, %c0_4] : memref<8x256xf32, #tpu.memory_space<vmem>>, vector<8x256xf32>
    tpu.vector_store %arg3[%c0_3, %c0_4], %5 {strides = array<i32>} : memref<8x256xf32, #tpu.memory_space<vmem>>, vector<8x256xf32>,
    return
  }
  func.func @transform_0(%arg0: i32) -> (i32, i32) {
    %c0_i32 = arith.constant 0 : i32
    %c0_i32_0 = arith.constant 0 : i32
    %c0_i32_1 = arith.constant 0 : i32
    return %c0_i32, %c0_i32_0 : i32, i32
  }
  func.func @transform_1(%arg0: i32) -> (i32, i32) {
    %c0_i32 = arith.constant 0 : i32
    %c0_i32_0 = arith.constant 0 : i32
    return %arg0, %c0_i32 : i32, i32
  }
  func.func @transform_2(%arg0: i32) -> (i32, i32) {
    %c0_i32 = arith.constant 0 : i32
    %c0_i32_0 = arith.constant 0 : i32
    return %arg0, %c0_i32 : i32, i32
  }
}

</mosaic_0001>

<bundles_post_ra>
// kernel: tpu_custom_call.1
= control target key start
LH: loop header
LB: loop body
LE: loop exit
PB: predicated region body
PF: predicated region fallthrough
CT: control target
= control target key end

     0   :  { %8 = vsyncpa [#allocation4], 0  ;;  %s134_s0 = inlined_call_operand.<no memory space> [shape: f32[1,1], index: 0, kind: input, shape index: {}]   ;;  %s135_s1 = inlined_call_operand.hbm [shape: f32[8,256], index: 1, kind: input, shape index: {}]   ;;  %s136_s2 = inlined_call_operand.hbm [shape: f32[8,256], index: 2, kind: output, shape index: {}]  }
   0x1   :  { %9 = vsyncpa [#allocation5], 0  ;;  %s17_s11 = sshll.u32 %s135_s1, 4  ;;  %s108_s12 = smov [#allocation3]   ;;  %s18_s11 = int_to_ptr.hbm [resolvable:$true] %s17_s11 }
   0x2   :  { %s19_s13 = sshll.u32 %s108_s12, 4  ;;  %s20_s13 = int_to_ptr.vmem [resolvable:$true] %s19_s13 }
   0x3   :  { %22 = dma.hbm_to_vmem [thread:$0]  %s18_s11, 256, %s20_s13, [#allocation4]  }
   0x4   :  { %104 = dma.done.wait [#allocation4], 256  }
   0x5   :  { %105 = vsyncadd [#allocation4], 4294967040  ;;  %v30_v0 = vstv %s134_s0  ;;  %v28_v1 = vld [vmem:[#allocation3] sm:$0xff]  ;;  %v29_v2 = vld [vmem:[#allocation3 + $0x8] sm:$0xff]  ;;  %s109_s16 = smov [#allocation6]   ;;  %s44_s1 = sshll.u32 %s136_s2, 4  ;;  %s45_s1 = int_to_ptr.hbm [resolvable:$true] %s44_s1 }
   0x6   :  { %v31_v3 = vmul.f32 %v30_v0, %v28_v1  ;;  %v32_v4 = vmul.f32 %v30_v0, %v29_v2  ;;  %s42_s17 = sshll.u32 %s109_s16, 4  ;;  %s43_s17 = int_to_ptr.vmem [resolvable:$true] %s42_s17 }
   0x8   :  { %v33_v5 = vmax.f32 %v31_v3, 0.0  ;;  %v34_v6 = vmax.f32 %v32_v4, 0.0 }
   0xa   :  { %35 = vst [vmem:[#allocation6] sm:$0xff] %v33_v5 }
   0xb   :  { %36 = vst [vmem:[#allocation6 + $0x8] sm:$0xff] %v34_v6 }
   0xc   :  { %47 = dma.vmem_to_hbm [thread:$0]  %s43_s17, 256, %s45_s1, [#allocation5]  }
   0xd   :  { %106 = dma.done.wait [#allocation5], 256  }
   0xe   :  { %107 = vsyncadd [#allocation5], 4294967040 }
   0xf   :  { %52 = vsyncpa [#allocation4], 1 }
  0x10   :  { %53 = vsyncpa [#allocation5], 1 }

</bundles_post_ra>
